<compile_context>
chip_gen: v6e
topology: v6e:2x2x1
jax: 0.10.0
libtpu: 0.0.40
codegen_flags: <defaults>
</compile_context>

<pallas_src>
import functools
import math

import jax
import jax.numpy as jnp
from jax.experimental import pallas as pl
from jax.experimental.pallas import tpu as pltpu


# ----------------------------------------------------------------------------
# In-kernel helpers (traced inside Pallas kernels)
# ----------------------------------------------------------------------------
def _layernorm(x, g, b, d_real, eps=1e-5):
    """LayerNorm over the lane-padded last dim; padded lanes are zero so sums
    over the full padded dim equal the real sums, and zero-padded gamma/beta
    re-zero the padded lanes on output."""
    mu = jnp.sum(x, axis=-1, keepdims=True) / d_real
    ex2 = jnp.sum(x * x, axis=-1, keepdims=True) / d_real
    var = ex2 - mu * mu
    inv = jax.lax.rsqrt(var + eps)
    return (x - mu) * inv * g + b


def _attention(q, k, v, n_head, d_head, bb, lq, lk):
    """Multi-head attention on batch-folded rows.

    q: (bb*lq, HP), k/v: (bb*lk, HP), all f32.  Per batch & per head (static,
    unrolled): scores use contiguous d_head column slices (K=d_head MXU
    contraction); the PV matmul keeps V masked to the head's lanes so each
    head's output lands in its own channels with a lane-dense 128-wide store.
    """
    hp = q.shape[-1]
    scale = 1.0 / math.sqrt(d_head)
    lane = jax.lax.broadcasted_iota(jnp.int32, (1, hp), 1)
    masks = [((lane >= h * d_head) & (lane < (h + 1) * d_head)).astype(jnp.bfloat16)
             for h in range(n_head)]
    outs = []
    for bi in range(bb):
        qb = q[bi * lq:(bi + 1) * lq]
        kb = k[bi * lk:(bi + 1) * lk]
        vb = v[bi * lk:(bi + 1) * lk].astype(jnp.bfloat16)   # cast once per batch
        acc = jnp.zeros((lq, hp), jnp.float32)
        for h in range(n_head):
            lo, hi = h * d_head, (h + 1) * d_head
            s = jax.lax.dot_general(
                qb[:, lo:hi].astype(jnp.bfloat16),
                kb[:, lo:hi].astype(jnp.bfloat16),
                (((1,), (1,)), ((), ())),
                preferred_element_type=jnp.float32) * scale
            s = s - jnp.max(s, axis=-1, keepdims=True)
            p = jnp.exp(s)
            # EUP approx reciprocal is off the VALU critical path (softmax only).
            p = p * pl.reciprocal(jnp.sum(p, axis=-1, keepdims=True), approx=True)
            acc = acc + jnp.dot(p.astype(jnp.bfloat16), vb * masks[h],
                                preferred_element_type=jnp.float32)
        outs.append(acc)
    return jnp.concatenate(outs, axis=0) if bb > 1 else outs[0]


# ----------------------------------------------------------------------------
# Pallas kernels
# ----------------------------------------------------------------------------
def _in_proj_kernel(x_ref, w1_ref, b1_ref, w2_ref, b2_ref, o_ref):
    # conv1x1 + BN1 + ReLU + conv1x1 + BN2  (BN folded into w/b at init time)
    x = x_ref[...].astype(jnp.bfloat16)
    h = jnp.maximum(jnp.dot(x, w1_ref[...], preferred_element_type=jnp.float32)
                    + b1_ref[...], 0.0)
    h = jnp.dot(h.astype(jnp.bfloat16), w2_ref[...],
                preferred_element_type=jnp.float32) + b2_ref[...]
    o_ref[...] = h.astype(o_ref.dtype)


def _encoder_stack_kernel(x_ref, wqkv_ref, wo_ref, wf1_ref, wf2_ref, bf1_ref, vec_ref,
                          o_ref, act_ref, *, n_head, d_head, d_real, bb, t):
    """One grid step = one encoder layer applied to a block of bb batches.

    vec rows: 0 bq, 1 bk, 2 bv, 3 bo, 4 ln1_g, 5 ln1_b, 6 bf2, 7 ln2_g, 8 ln2_b,
              9 final_norm_g, 10 final_norm_b.
    """
    l = pl.program_id(1)
    hp = act_ref.shape[-1]

    @pl.when(l == 0)
    def _():
        act_ref[...] = x_ref[...].reshape(bb * t, hp)

    vec = vec_ref[0]                                   # (K, HP)
    x = act_ref[...]                                   # (bb*T, HP) f32
    x_bf = x.astype(jnp.bfloat16)

    # --- self attention: fused QKV projection + per-head attention + out-proj ---
    qkv = jnp.dot(x_bf, wqkv_ref[0], preferred_element_type=jnp.float32)
    q = qkv[:, :hp] + vec[0:1]
    k = qkv[:, hp:2 * hp] + vec[1:2]
    v = qkv[:, 2 * hp:] + vec[2:3]
    attn = _attention(q, k, v, n_head, d_head, bb, t, t)
    attn = jnp.dot(attn.astype(jnp.bfloat16), wo_ref[0],
                   preferred_element_type=jnp.float32) + vec[3:4]
    x = _layernorm(x + attn, vec[4:5], vec[5:6], d_real)

    # --- feed-forward ---
    x_bf = x.astype(jnp.bfloat16)
    h = jnp.maximum(jnp.dot(x_bf, wf1_ref[0], preferred_element_type=jnp.float32)
                    + bf1_ref[0], 0.0)
    h = jnp.dot(h.astype(jnp.bfloat16), wf2_ref[0],
                preferred_element_type=jnp.float32) + vec[6:7]
    x = _layernorm(x + h, vec[7:8], vec[8:9], d_real)

    act_ref[...] = x                                   # stays resident in VMEM

    @pl.when(l == pl.num_programs(1) - 1)
    def _():
        xf = _layernorm(x, vec[9:10], vec[10:11], d_real)   # encoder final norm
        o_ref[...] = xf.astype(o_ref.dtype).reshape(bb, t, hp)


def _decoder_stack_kernel(q0_ref, mem_ref,
                          wqkvs_ref, wos_ref, wqc_ref, wkvc_ref, woc_ref,
                          wf1_ref, wf2_ref, bf1_ref, vec_ref, head_ref,
                          emb_ref, score_ref, act_ref, mem_scr,
                          *, n_head, d_head, d_real, bb, nq, t):
    """One grid step = one decoder layer applied to a block of bb batches.

    vec rows: 0 bq_s, 1 bk_s, 2 bv_s, 3 bo_s, 4 ln1_g, 5 ln1_b,
              6 bq_c, 7 bk_c, 8 bv_c, 9 bo_c, 10 ln2_g, 11 ln2_b,
              12 bf2, 13 ln3_g, 14 ln3_b, 15 final_norm_g, 16 final_norm_b.
    head:     [:, :HP] regressor weights (row j = query j), [:, HP] regressor
              bias, [:, HP+1] linspace(0,1,NQ) query weights.
    """
    l = pl.program_id(1)
    hp = act_ref.shape[-1]

    @pl.when(l == 0)
    def _():
        p = q0_ref[...]                                # (NQ, HP) learned queries
        act_ref[...] = jnp.concatenate([p] * bb, axis=0) if bb > 1 else p
        mem_scr[...] = mem_ref[...].reshape(bb * t, hp)

    vec = vec_ref[0]
    tq = act_ref[...]                                  # (bb*NQ, HP) f32
    mem = mem_scr[...]                                 # (bb*T, HP) bf16

    # --- self attention over the queries (fused QKV) ---
    tq_bf = tq.astype(jnp.bfloat16)
    qkv = jnp.dot(tq_bf, wqkvs_ref[0], preferred_element_type=jnp.float32)
    q = qkv[:, :hp] + vec[0:1]
    k = qkv[:, hp:2 * hp] + vec[1:2]
    v = qkv[:, 2 * hp:] + vec[2:3]
    a = _attention(q, k, v, n_head, d_head, bb, nq, nq)
    a = jnp.dot(a.astype(jnp.bfloat16), wos_ref[0],
                preferred_element_type=jnp.float32) + vec[3:4]
    tq = _layernorm(tq + a, vec[4:5], vec[5:6], d_real)

    # --- cross attention over encoder memory (fused KV) ---
    tq_bf = tq.astype(jnp.bfloat16)
    qc = jnp.dot(tq_bf, wqc_ref[0], preferred_element_type=jnp.float32) + vec[6:7]
    kvc = jnp.dot(mem, wkvc_ref[0], preferred_element_type=jnp.float32)
    kc = kvc[:, :hp] + vec[7:8]
    vc = kvc[:, hp:] + vec[8:9]
    a = _attention(qc, kc, vc, n_head, d_head, bb, nq, t)
    a = jnp.dot(a.astype(jnp.bfloat16), woc_ref[0],
                preferred_element_type=jnp.float32) + vec[9:10]
    tq = _layernorm(tq + a, vec[10:11], vec[11:12], d_real)

    # --- feed-forward ---
    tq_bf = tq.astype(jnp.bfloat16)
    h = jnp.maximum(jnp.dot(tq_bf, wf1_ref[0], preferred_element_type=jnp.float32)
                    + bf1_ref[0], 0.0)
    h = jnp.dot(h.astype(jnp.bfloat16), wf2_ref[0],
                preferred_element_type=jnp.float32) + vec[12:13]
    tq = _layernorm(tq + h, vec[13:14], vec[14:15], d_real)

    act_ref[...] = tq                                  # stays resident in VMEM

    @pl.when(l == pl.num_programs(1) - 1)
    def _():
        # decoder final norm + regressor head
        tf = _layernorm(tq, vec[15:16], vec[16:17], d_real)
        emb_ref[...] = tf.astype(emb_ref.dtype).reshape(bb, nq, hp)
        hd = head_ref[...]
        regw = hd[:, :hp]                              # (NQ, HP)
        regb = hd[:, hp:hp + 1]                        # (NQ, 1)
        wvec = hd[:, hp + 1:hp + 2]                    # (NQ, 1)
        for bi in range(bb):
            tb = tf[bi * nq:(bi + 1) * nq]
            s = jnp.sum(tb * regw, axis=-1, keepdims=True) + regb        # diag
            ns = jax.nn.sigmoid(s)
            ns = ns / jnp.sum(ns, axis=0, keepdims=True)                 # exact div
            sval = jnp.sum(wvec * ns, axis=0, keepdims=True)             # (1, 1)
            score_ref[bi] = jnp.broadcast_to(sval, score_ref.shape[1:])  # lane-dense


# ----------------------------------------------------------------------------
# Tiling helpers
# ----------------------------------------------------------------------------
def _pick_row_tile(m, cap=256):
    """Largest multiple-of-8 divisor of m that is <= cap, preferring >=2 grid
    slices (v7x megacore); falls back to the full extent."""
    cands = [s for s in range(8, min(m, cap) + 1, 8) if m % s == 0]
    if not cands:
        return m
    multi = [s for s in cands if m // s >= 2]
    return max(multi) if multi else max(cands)


def _pick_batch_block(bsz, rows_per_item, target_rows=128):
    """Batches folded per grid step: fill ~target_rows matmul rows but keep at
    least two parallel grid slices when bsz >= 2 (v7x has 2 TensorCores)."""
    bb = max(1, min(bsz, target_rows // max(1, rows_per_item)))
    if bsz >= 2:
        bb = min(bb, max(1, bsz // 2))
    while bsz % bb:
        bb -= 1
    return bb


# ----------------------------------------------------------------------------
# Pallas wrappers
# ----------------------------------------------------------------------------
def in_proj(x2d, params):
    m, c = x2d.shape
    mp = params['p1_w'].shape[1]
    hp = params['hp']
    tm = _pick_row_tile(m)
    return pl.pallas_call(
        _in_proj_kernel,
        out_shape=jax.ShapeDtypeStruct((m, hp), jnp.float32),
        grid=(m // tm,),
        in_specs=[
            pl.BlockSpec((tm, c), lambda i: (i, 0)),
            pl.BlockSpec((c, mp), lambda i: (0, 0)),
            pl.BlockSpec((1, mp), lambda i: (0, 0)),
            pl.BlockSpec((mp, hp), lambda i: (0, 0)),
            pl.BlockSpec((1, hp), lambda i: (0, 0)),
        ],
        out_specs=pl.BlockSpec((tm, hp), lambda i: (i, 0)),
        compiler_params=pltpu.CompilerParams(dimension_semantics=("parallel",)),
    )(x2d, params['p1_w'], params['p1_b'], params['p2_w'], params['p2_b'])


def encoder_stack(x, params):
    bsz, t, hp = x.shape
    enc = params['enc']
    n_layers = enc['wqkv'].shape[0]
    k_vec = enc['vec'].shape[1]
    fp = params['fp']
    bb = _pick_batch_block(bsz, t)
    kernel = functools.partial(
        _encoder_stack_kernel, n_head=params['n_head'], d_head=params['d_head'],
        d_real=params['hidden'], bb=bb, t=t)
    return pl.pallas_call(
        kernel,
        out_shape=jax.ShapeDtypeStruct((bsz, t, hp), jnp.bfloat16),
        grid=(bsz // bb, n_layers),
        in_specs=[
            pl.BlockSpec((bb, t, hp), lambda b, l: (b, 0, 0)),          # activation
            pl.BlockSpec((1, hp, 3 * hp), lambda b, l: (l, 0, 0)),      # Wqkv
            pl.BlockSpec((1, hp, hp), lambda b, l: (l, 0, 0)),          # Wo
            pl.BlockSpec((1, hp, fp), lambda b, l: (l, 0, 0)),          # Wf1
            pl.BlockSpec((1, fp, hp), lambda b, l: (l, 0, 0)),          # Wf2
            pl.BlockSpec((1, 1, fp), lambda b, l: (l, 0, 0)),           # bf1
            pl.BlockSpec((1, k_vec, hp), lambda b, l: (l, 0, 0)),       # packed vecs
        ],
        out_specs=pl.BlockSpec((bb, t, hp), lambda b, l: (b, 0, 0)),
        scratch_shapes=[pltpu.VMEM((bb * t, hp), jnp.float32)],
        compiler_params=pltpu.CompilerParams(
            dimension_semantics=("parallel", "arbitrary")),
    )(x, enc['wqkv'], enc['wo'], enc['wf1'], enc['wf2'], enc['bf1'], enc['vec'])


def decoder_stack(proto, memory, params):
    bsz, t, hp = memory.shape
    nq = proto.shape[0]
    dec = params['dec']
    n_layers = dec['wqkv_s'].shape[0]
    k_vec = dec['vec'].shape[1]
    fp = params['fp']
    bb = _pick_batch_block(bsz, max(nq, t))
    kernel = functools.partial(
        _decoder_stack_kernel, n_head=params['n_head'], d_head=params['d_head'],
        d_real=params['hidden'], bb=bb, nq=nq, t=t)
    out_shape = (jax.ShapeDtypeStruct((bsz, nq, hp), jnp.float32),
                 jax.ShapeDtypeStruct((bsz, 1, 128), jnp.float32))
    out_specs = (pl.BlockSpec((bb, nq, hp), lambda b, l: (b, 0, 0)),
                 pl.BlockSpec((bb, 1, 128), lambda b, l: (b, 0, 0)))
    return pl.pallas_call(
        kernel,
        out_shape=out_shape,
        grid=(bsz // bb, n_layers),
        in_specs=[
            pl.BlockSpec((nq, hp), lambda b, l: (0, 0)),                # prototype
            pl.BlockSpec((bb, t, hp), lambda b, l: (b, 0, 0)),          # memory (bf16)
            pl.BlockSpec((1, hp, 3 * hp), lambda b, l: (l, 0, 0)),      # Wqkv self
            pl.BlockSpec((1, hp, hp), lambda b, l: (l, 0, 0)),          # Wo self
            pl.BlockSpec((1, hp, hp), lambda b, l: (l, 0, 0)),          # Wq cross
            pl.BlockSpec((1, hp, 2 * hp), lambda b, l: (l, 0, 0)),      # Wkv cross
            pl.BlockSpec((1, hp, hp), lambda b, l: (l, 0, 0)),          # Wo cross
            pl.BlockSpec((1, hp, fp), lambda b, l: (l, 0, 0)),          # Wf1
            pl.BlockSpec((1, fp, hp), lambda b, l: (l, 0, 0)),          # Wf2
            pl.BlockSpec((1, 1, fp), lambda b, l: (l, 0, 0)),           # bf1
            pl.BlockSpec((1, k_vec, hp), lambda b, l: (l, 0, 0)),       # packed vecs
            pl.BlockSpec((nq, hp + 128), lambda b, l: (0, 0)),          # head pack
        ],
        out_specs=out_specs,
        scratch_shapes=[pltpu.VMEM((bb * nq, hp), jnp.float32),
                        pltpu.VMEM((bb * t, hp), jnp.bfloat16)],
        compiler_params=pltpu.CompilerParams(
            dimension_semantics=("parallel", "arbitrary")),
    )(proto, memory, dec['wqkv_s'], dec['wo_s'], dec['wq_c'], dec['wkv_c'],
      dec['wo_c'], dec['wf1'], dec['wf2'], dec['bf1'], dec['vec'], params['head'])


# ----------------------------------------------------------------------------
# Forward pass
# ----------------------------------------------------------------------------
def gdlt_forward(x, params):
    bsz, t, c = x.shape
    hp = params['hp']
    h = in_proj(x.reshape(bsz * t, c), params)            # (B*T, HP) f32
    memory = encoder_stack(h.reshape(bsz, t, hp), params)  # (B, T, HP) bf16
    embed, score = decoder_stack(params['prototype'], memory, params)
    return {'output': score[:, 0, 0], 'embed': embed[:, :, :params['hidden']]}


# ----------------------------------------------------------------------------
# Deterministic parameter initialization (128-padding, BN folding, layer stacking)
# ----------------------------------------------------------------------------
def _round_up_128(n):
    return max(128, ((n + 127) // 128) * 128)


def _pad2(w, rows, cols):
    return jnp.pad(w, ((0, rows - w.shape[0]), (0, cols - w.shape[1])))


def _pad_row(v, n):
    return jnp.pad(v, (0, n - v.shape[0])).reshape(1, n)


def _dense(key, fan_in, fan_out, w_scale=0.05):
    kw, kb = jax.random.split(key)
    w = jax.random.normal(kw, (fan_in, fan_out), jnp.float32) * w_scale
    b = jax.random.normal(kb, (fan_out,), jnp.float32) * 0.01
    return w, b


def _enc_layer(key, dim, hp, ffn, fp, fin_g, fin_b):
    ks = jax.random.split(key, 6)
    wq, bq = _dense(ks[0], dim, dim)
    wk, bk = _dense(ks[1], dim, dim)
    wv, bv = _dense(ks[2], dim, dim)
    wo, bo = _dense(ks[3], dim, dim)
    w1, b1 = _dense(ks[4], dim, ffn)
    w2, b2 = _dense(ks[5], ffn, dim)
    ones = jnp.ones((dim,), jnp.float32)
    zeros = jnp.zeros((dim,), jnp.float32)
    vec = jnp.concatenate([
        _pad_row(bq, hp), _pad_row(bk, hp), _pad_row(bv, hp), _pad_row(bo, hp),
        _pad_row(ones, hp), _pad_row(zeros, hp),
        _pad_row(b2, hp),
        _pad_row(ones, hp), _pad_row(zeros, hp),
        fin_g, fin_b], axis=0)                            # (11, HP)
    return dict(
        wqkv=jnp.concatenate([_pad2(wq, hp, hp), _pad2(wk, hp, hp),
                              _pad2(wv, hp, hp)], axis=1).astype(jnp.bfloat16),
        wo=_pad2(wo, hp, hp).astype(jnp.bfloat16),
        wf1=_pad2(w1, hp, fp).astype(jnp.bfloat16),
        wf2=_pad2(w2, fp, hp).astype(jnp.bfloat16),
        bf1=_pad_row(b1, fp),
        vec=vec,
    )


def _dec_layer(key, dim, hp, ffn, fp, fin_g, fin_b):
    ks = jax.random.split(key, 10)
    swq, sbq = _dense(ks[0], dim, dim)
    swk, sbk = _dense(ks[1], dim, dim)
    swv, sbv = _dense(ks[2], dim, dim)
    swo, sbo = _dense(ks[3], dim, dim)
    cwq, cbq = _dense(ks[4], dim, dim)
    cwk, cbk = _dense(ks[5], dim, dim)
    cwv, cbv = _dense(ks[6], dim, dim)
    cwo, cbo = _dense(ks[7], dim, dim)
    w1, b1 = _dense(ks[8], dim, ffn)
    w2, b2 = _dense(ks[9], ffn, dim)
    ones = jnp.ones((dim,), jnp.float32)
    zeros = jnp.zeros((dim,), jnp.float32)
    vec = jnp.concatenate([
        _pad_row(sbq, hp), _pad_row(sbk, hp), _pad_row(sbv, hp), _pad_row(sbo, hp),
        _pad_row(ones, hp), _pad_row(zeros, hp),
        _pad_row(cbq, hp), _pad_row(cbk, hp), _pad_row(cbv, hp), _pad_row(cbo, hp),
        _pad_row(ones, hp), _pad_row(zeros, hp),
        _pad_row(b2, hp),
        _pad_row(ones, hp), _pad_row(zeros, hp),
        fin_g, fin_b], axis=0)                            # (17, HP)
    return dict(
        wqkv_s=jnp.concatenate([_pad2(swq, hp, hp), _pad2(swk, hp, hp),
                                _pad2(swv, hp, hp)], axis=1).astype(jnp.bfloat16),
        wo_s=_pad2(swo, hp, hp).astype(jnp.bfloat16),
        wq_c=_pad2(cwq, hp, hp).astype(jnp.bfloat16),
        wkv_c=jnp.concatenate([_pad2(cwk, hp, hp),
                               _pad2(cwv, hp, hp)], axis=1).astype(jnp.bfloat16),
        wo_c=_pad2(cwo, hp, hp).astype(jnp.bfloat16),
        wf1=_pad2(w1, hp, fp).astype(jnp.bfloat16),
        wf2=_pad2(w2, fp, hp).astype(jnp.bfloat16),
        bf1=_pad_row(b1, fp),
        vec=vec,
    )


def init_gdlt_params(key, in_dim, hidden_dim, n_head, n_encoder, n_decoder, n_query):
    assert n_encoder >= 1 and n_decoder >= 1
    assert hidden_dim % n_head == 0
    mid = in_dim // 2
    ffn = 3 * hidden_dim
    hp = _round_up_128(hidden_dim)
    mp = _round_up_128(mid)
    fp = _round_up_128(ffn)

    keys = jax.random.split(key, 4 + n_encoder + n_decoder)
    w1, b1 = _dense(keys[0], in_dim, mid)
    w2, b2 = _dense(keys[1], mid, hidden_dim)

    # BatchNorm1d (eval mode, running_mean=0, running_var=1, gamma=1, beta=0)
    # folded into the conv weights: w' = w/sqrt(var+eps), b' = b/sqrt(var+eps).
    # TODO(synk): training-mode batch statistics are not implemented.
    bn_scale = 1.0 / math.sqrt(1.0 + 1e-5)
    w1, b1 = w1 * bn_scale, b1 * bn_scale
    w2, b2 = w2 * bn_scale, b2 * bn_scale

    fin_g = _pad_row(jnp.ones((hidden_dim,), jnp.float32), hp)
    fin_b = _pad_row(jnp.zeros((hidden_dim,), jnp.float32), hp)

    enc_layers = [_enc_layer(keys[4 + i], hidden_dim, hp, ffn, fp, fin_g, fin_b)
                  for i in range(n_encoder)]
    dec_layers = [_dec_layer(keys[4 + n_encoder + i], hidden_dim, hp, ffn, fp,
                             fin_g, fin_b) for i in range(n_decoder)]
    enc = jax.tree_util.tree_map(lambda *xs: jnp.stack(xs, axis=0), *enc_layers)
    dec = jax.tree_util.tree_map(lambda *xs: jnp.stack(xs, axis=0), *dec_layers)

    # regressor (Linear(hidden, n_query)) + linspace query weights, packed.
    kw, kb = jax.random.split(keys[2])
    reg_w = jax.random.normal(kw, (n_query, hidden_dim), jnp.float32) * 0.05
    reg_b = jax.random.normal(kb, (n_query,), jnp.float32) * 0.01
    head = jnp.zeros((n_query, hp + 128), jnp.float32)
    head = head.at[:, :hidden_dim].set(reg_w)
    head = head.at[:, hp].set(reg_b)
    head = head.at[:, hp + 1].set(jnp.linspace(0.0, 1.0, n_query))

    proto = jax.random.normal(keys[3], (n_query, hidden_dim), jnp.float32) * 0.05

    return dict(
        hidden=hidden_dim, hp=hp, fp=fp,
        n_head=n_head, d_head=hidden_dim // n_head,
        p1_w=_pad2(w1, in_dim, mp).astype(jnp.bfloat16), p1_b=_pad_row(b1, mp),
        p2_w=_pad2(w2, mp, hp).astype(jnp.bfloat16), p2_b=_pad_row(b2, hp),
        enc=enc, dec=dec,
        prototype=_pad2(proto, n_query, hp),
        head=head,
    )


# ----------------------------------------------------------------------------
if __name__ == "__main__":
    # Small, module-consistent shapes.
    B, T = 2, 8
    IN_DIM, HIDDEN, N_HEAD = 64, 32, 2
    N_ENC, N_DEC, N_QUERY = 2, 2, 4

    key = jax.random.PRNGKey(0)
    k_params, k_x = jax.random.split(key)
    params = init_gdlt_params(k_params, IN_DIM, HIDDEN, N_HEAD, N_ENC, N_DEC, N_QUERY)
    x = jax.random.normal(k_x, (B, T, IN_DIM), jnp.float32)

    result = gdlt_forward(x, params)
    jax.block_until_ready(result)

    assert result['output'].shape == (B,)
    assert result['embed'].shape == (B, N_QUERY, HIDDEN)
    assert bool(jnp.all(jnp.isfinite(result['output'])))
    assert bool(jnp.all(jnp.isfinite(result['embed'])))
    print("KERNEL_OK")
</pallas_src>

<mosaic_0001>
module attributes {stable_mosaic.version = 11 : i64} {
  func.func @_in_proj_kernel(%arg0: i32, %arg1: memref<8x64xf32, #tpu.memory_space<vmem>>, %arg2: memref<64x128xbf16, #tpu.memory_space<vmem>>, %arg3: memref<1x128xf32, #tpu.memory_space<vmem>>, %arg4: memref<128x128xbf16, #tpu.memory_space<vmem>>, %arg5: memref<1x128xf32, #tpu.memory_space<vmem>>, %arg6: memref<8x128xf32, #tpu.memory_space<vmem>>) attributes {dimension_semantics = [#tpu.dimension_semantics<parallel>], iteration_bounds = array<i64: 2>, scalar_prefetch = 0 : i64, scratch_operands = 0 : i64, tpu.core_type = #tpu.core_type<tc>, window_params = [{transform_indices = @transform_0, window_bounds = array<i64: 8, 64>}, {pipeline_mode = #tpu.pipeline_mode<synchronous>, transform_indices = @transform_1, window_bounds = array<i64: 64, 128>}, {pipeline_mode = #tpu.pipeline_mode<synchronous>, transform_indices = @transform_2, window_bounds = array<i64: 1, 128>}, {pipeline_mode = #tpu.pipeline_mode<synchronous>, transform_indices = @transform_3, window_bounds = array<i64: 128, 128>}, {pipeline_mode = #tpu.pipeline_mode<synchronous>, transform_indices = @transform_4, window_bounds = array<i64: 1, 128>}, {transform_indices = @transform_5, window_bounds = array<i64: 8, 128>}]} {
    %c0 = arith.constant 0 : index
    %c0_0 = arith.constant 0 : index
    %0 = vector.load %arg1[%c0, %c0_0] : memref<8x64xf32, #tpu.memory_space<vmem>>, vector<8x64xf32>
    %1 = arith.truncf %0 : vector<8x64xf32> to vector<8x64xbf16>
    %c0_1 = arith.constant 0 : index
    %c0_2 = arith.constant 0 : index
    %2 = vector.load %arg2[%c0_1, %c0_2] : memref<64x128xbf16, #tpu.memory_space<vmem>>, vector<64x128xbf16>
    %cst = arith.constant dense<0.000000e+00> : vector<8x128xf32>
    %3 = tpu.matmul %1, %2, %cst {dimension_numbers = #tpu.dot_dimension_numbers<[1], [0], [0], [1], [0, 0, 1, 1], [], []>} : vector<8x64xbf16>, vector<64x128xbf16>, vector<8x128xf32> -> vector<8x128xf32>
    %c0_3 = arith.constant 0 : index
    %c0_4 = arith.constant 0 : index
    %4 = vector.load %arg3[%c0_3, %c0_4] : memref<1x128xf32, #tpu.memory_space<vmem>>, vector<1x128xf32>
    %5 = vector.broadcast %4 : vector<1x128xf32> to vector<8x128xf32>
    %6 = arith.addf %3, %5 : vector<8x128xf32>
    %cst_5 = arith.constant 0.000000e+00 : f32
    %7 = vector.broadcast %cst_5 : f32 to vector<8x128xf32>
    %8 = arith.maximumf %6, %7 : vector<8x128xf32>
    %9 = arith.truncf %8 : vector<8x128xf32> to vector<8x128xbf16>
    %c0_6 = arith.constant 0 : index
    %c0_7 = arith.constant 0 : index
    %10 = vector.load %arg4[%c0_6, %c0_7] : memref<128x128xbf16, #tpu.memory_space<vmem>>, vector<128x128xbf16>
    %cst_8 = arith.constant dense<0.000000e+00> : vector<8x128xf32>
    %11 = tpu.matmul %9, %10, %cst_8 {dimension_numbers = #tpu.dot_dimension_numbers<[1], [0], [0], [1], [0, 0, 1, 1], [], []>} : vector<8x128xbf16>, vector<128x128xbf16>, vector<8x128xf32> -> vector<8x128xf32>
    %c0_9 = arith.constant 0 : index
    %c0_10 = arith.constant 0 : index
    %12 = vector.load %arg5[%c0_9, %c0_10] : memref<1x128xf32, #tpu.memory_space<vmem>>, vector<1x128xf32>
    %13 = vector.broadcast %12 : vector<1x128xf32> to vector<8x128xf32>
    %14 = arith.addf %11, %13 : vector<8x128xf32>
    %c0_11 = arith.constant 0 : index
    %c0_12 = arith.constant 0 : index
    %15 = vector.load %arg6[%c0_11, %c0_12] : memref<8x128xf32, #tpu.memory_space<vmem>>, vector<8x128xf32>
    tpu.vector_store %arg6[%c0_11, %c0_12], %14 {strides = array<i32>} : memref<8x128xf32, #tpu.memory_space<vmem>>, vector<8x128xf32>,
    return
  }
  func.func @transform_0(%arg0: i32) -> (i32, i32) {
    %c0_i32 = arith.constant 0 : i32
    %c0_i32_0 = arith.constant 0 : i32
    return %arg0, %c0_i32 : i32, i32
  }
  func.func @transform_1(%arg0: i32) -> (i32, i32) {
    %c0_i32 = arith.constant 0 : i32
    %c0_i32_0 = arith.constant 0 : i32
    %c0_i32_1 = arith.constant 0 : i32
    return %c0_i32, %c0_i32_0 : i32, i32
  }
  func.func @transform_2(%arg0: i32) -> (i32, i32) {
    %c0_i32 = arith.constant 0 : i32
    %c0_i32_0 = arith.constant 0 : i32
    %c0_i32_1 = arith.constant 0 : i32
    return %c0_i32, %c0_i32_0 : i32, i32
  }
  func.func @transform_3(%arg0: i32) -> (i32, i32) {
    %c0_i32 = arith.constant 0 : i32
    %c0_i32_0 = arith.constant 0 : i32
    %c0_i32_1 = arith.constant 0 : i32
    return %c0_i32, %c0_i32_0 : i32, i32
  }
  func.func @transform_4(%arg0: i32) -> (i32, i32) {
    %c0_i32 = arith.constant 0 : i32
    %c0_i32_0 = arith.constant 0 : i32
    %c0_i32_1 = arith.constant 0 : i32
    return %c0_i32, %c0_i32_0 : i32, i32
  }
  func.func @transform_5(%arg0: i32) -> (i32, i32) {
    %c0_i32 = arith.constant 0 : i32
    %c0_i32_0 = arith.constant 0 : i32
    return %arg0, %c0_i32 : i32, i32
  }
}

</mosaic_0001>

<bundles_post_ra>
// kernel: tpu_custom_call.1
= control target key start
LH: loop header
LB: loop body
LE: loop exit
PB: predicated region body
PF: predicated region fallthrough
CT: control target
= control target key end

     0   :  { %10 = vsyncpa [#allocation3], 0  ;;  %s1107_s0 = inlined_call_operand.hbm [shape: f32[16,64], index: 0, kind: input, shape index: {}]   ;;  %s1108_s1 = inlined_call_operand.hbm [shape: bf16[64,128], index: 1, kind: input, shape index: {}]   ;;  %s1109_s2 = inlined_call_operand.vmem [shape: f32[1,128], index: 2, kind: input, shape index: {}]   ;;  %s1110_s3 = inlined_call_operand.hbm [shape: bf16[128,128], index: 3, kind: input, shape index: {}]   ;;  %s1111_s4 = inlined_call_operand.vmem [shape: f32[1,128], index: 4, kind: input, shape index: {}]   ;;  %s1112_s5 = inlined_call_operand.hbm [shape: f32[16,128], index: 5, kind: output, shape index: {}]  }
   0x1   :  { %12 = vsyncpa [#allocation3 + $0x1], 0 }
   0x2   :  { %13 = vsyncpa [#allocation6], 0 }
   0x3   :  { %14 = vsyncpa [#allocation4], 0 }
   0x4   :  { %16 = vsyncpa [#allocation4 + $0x1], 0  ;;  %s920_s18 = smov 0   ;;  %s922_s19 = smov 0  }
   0x5   :  { %s924_s20 = smov 0   ;;  %s926_s21 = smov 0  }
   0x6 LB: > { %s941_s22 = sadd.s32 4294967295, %s880_s21   ;;  %s572_s23 = sadd.s32 4294967294, %s880_s21   ;;  %s880_s21 = sphi %s926_s21, %s1134_s21   ;;  %s876_s20 = sphi %s924_s20, %s1133_s20   ;;  %s872_s19 = sphi %s922_s19, %s1132_s19   ;;  %s868_s18 = sphi %s920_s18, %s1131_s18  }
   0x7   : > { %p42_p0 = scmp.ne.s32.totalorder %s872_s19, %s868_s18  ;;  %p1113_p1 = scmp.eq.s32.totalorder %s941_s22, 0 }
   0x8   : > { %p156_p3 = scmp.eq.s32.totalorder %s572_s23, 1  ;;  %p573_p5 = scmp.ge.s32.totalorder %s880_s21, 1 }
   0x9   : > { %p950_p4 = por %p1113_p1, %p42_p0  ;;  %p163_p7 = scmp.lt.s32.totalorder %s880_s21, 3 }
   0xa   : > { %p955_p6 = por %p156_p3, %p42_p0  ;;  %s882_s27 = smov [#allocation5]  }
   0xb   : > { %s1117_s24 = scalar_select %p950_p4, 1, 0 }
   0xc   : > { %s1118_s25 = scalar_select %p955_p6, 1, 0 }
   0xd   : > { %p960_p8 = pnand %p573_p5, %p163_p7  ;;  %s175_s28 = sshll.u32 %s882_s27, 4  ;;  %s176_s28 = int_to_ptr.vmem [resolvable:$true] %s175_s28 }
   0xe   : > { %s883_s30 = smov [#allocation7]   ;;  %s743_s7 = scalar_lea.vmem %s176_s28, 512 }
   0xf   : > { %s1119_s26 = scalar_select %p960_p8, 1, 0 }
  0x10   : > { %p661_p9 = pneg %p960_p8  ;;  %s191_s6 = sshll.u32 %s883_s30, 4  ;;  %s192_s6 = int_to_ptr.vmem [resolvable:$true] %s191_s6 }
  0x11   : > { %p744_p13 = scmp.ne.s32.totalorder %s176_s28, %s743_s7  ;;  %p751_p5 = scmp.lt.s32.totalorder %s176_s28, %s176_s28 }
  0x12   : > { %p969_p11 = pnand %p661_p9, %p1113_p1  ;;  %p752_p7 = scmp.lt.s32.totalorder %s743_s7, %s743_s7 }
  0x14   : > { %p734_p12 = pneg %p969_p11  ;;  %p753_p10 = por %p752_p7, %p751_p5 }
  0x16   : > { %p746_p0 = pnand %p744_p13, %p734_p12 }
  0x18   : > { %p747_p3 = pneg %p746_p0 }
  0x1a   : > { %p754_p9 = pnand %p753_p10, %p747_p3 }
  0x1c   : > { %757 = shalt.err (!%p754_p9)
}
  0x1d   : > { %s884_s8 = smov 64   ;;  %s885_s9 = smov 4  }
  0x1e   : > { %664 = dma.hbm_to_vmem [thread:$0]  (!%p969_p11), %s1108_s1, 512, %s176_s28, [#allocation6], %s884_s8, %s884_s8, %s885_s9  }
  0x1f   : > { %s769_s12 = scalar_lea.vmem %s192_s6, 1024  ;;  %p777_p2 = scmp.lt.s32.totalorder %s192_s6, %s192_s6 }
  0x20   : > { %p770_p1 = scmp.ne.s32.totalorder %s192_s6, %s769_s12  ;;  %p778_p6 = scmp.lt.s32.totalorder %s769_s12, %s769_s12 }
  0x22   : > { %p772_p13 = pnand %p770_p1, %p734_p12  ;;  %p779_p5 = por %p778_p6, %p777_p2 }
  0x24   : > { %p773_p0 = pneg %p772_p13 }
  0x26   : > { %p780_p10 = pnand %p779_p5, %p773_p0 }
  0x28   : > { %783 = shalt.err (!%p780_p10)
}
  0x29   : > { %667 = dma.hbm_to_vmem [thread:$0]  (!%p969_p11), %s1110_s3, 1024, %s192_s6, [#allocation6], %s884_s8, %s884_s8, %s885_s9  }
  0x2a   : > { %s992_s15 = sadd.s32 1, %s880_s21   ;;  %s29_s16 = sadd.s32 1, %s876_s20 }
  0x2b   : > { %s26_s17 = ssub.s32 %s880_s21, %s992_s15  ;;  %p36_p1 = scmp.ne.s32.totalorder %s876_s20, %s872_s19 }
  0x2c   : > { %p27_p2 = scmp.eq.s32.totalorder %s26_s17, 0  ;;  %p37_p6 = scmp.eq.s32.totalorder %s880_s21, 0 }
  0x2d   : > { %p1121_p12 = scmp.eq.s32.totalorder %s941_s22, 1  ;;  %p678_p7 = scmp.lt.s32.totalorder %s880_s21, 2 }
  0x2e   : > { %s1008_s27 = scalar_select %p27_p2, %s876_s20, %s29_s16  }
  0x2f   : > { %p1002_p3 = por %p1121_p12, %p36_p1  ;;  %p38_p9 = por %p37_p6, %p36_p1 }
  0x30   : > { %s208_s28 = sand.u32 1, %s876_s20   ;;  %s578_s30 = sshll.u32 %s880_s21, 7 }
  0x31   : > { %s1122_s23 = scalar_select %p1002_p3, 1, 0 }
  0x32   : > { %s577_s29 = sshll.u32 %s208_s28, 3  ;;  %s1015_s8 = scalar_lea.hbm %s1107_s0, %s578_s30 }
  0x33   : > { %s212_s9 = scalar_lea.vmem [#allocation2], %s577_s29  ;;  %p1017_p11 = pnand %p678_p7, %p38_p9 }
  0x34   : > { %s219_s10 = sshll.u32 %s212_s9, 4  ;;  %s209_s12 = scalar_lea.sflag [#allocation3], %s208_s28  ;;  %s220_s10 = int_to_ptr.vmem [resolvable:$true] %s219_s10 }
  0x35   : > { %s784_s13 = scalar_lea.hbm %s1015_s8, 128  ;;  %p786_p0 = pneg %p1017_p11 }
  0x36   : > { %p785_p13 = scmp.ne.s32.totalorder %s1015_s8, %s784_s13  ;;  %s789_s17 = scalar_lea.hbm %s1107_s0, 256 }
  0x37   : > { %p790_p1 = scmp.lt.s32.totalorder %s1015_s8, %s1107_s0  ;;  %p791_p2 = scmp.lt.s32.totalorder %s789_s17, %s784_s13 }
  0x38   : > { %p787_p5 = pnand %p786_p0, %p785_p13 }
  0x39   : > { %p792_p6 = por %p791_p2, %p790_p1 }
  0x3a   : > { %p788_p10 = pneg %p787_p5 }
  0x3c   : > { %p793_p12 = pnand %p792_p6, %p788_p10 }
  0x3e   : > { %796 = shalt.err (!%p793_p12)
}
  0x3f   : > { %s797_s6 = scalar_lea.vmem %s220_s10, 128  ;;  %s886_s28 = smov [#allocation2]  }
  0x40   : > { %p798_p7 = scmp.ne.s32.totalorder %s220_s10, %s797_s6  ;;  %s802_s7 = sshll.u32 %s886_s28, 4  ;;  %s803_s7 = int_to_ptr.vmem [resolvable:$false] %s802_s7 }
  0x41   : > { %s804_s9 = scalar_lea.vmem %s803_s7, 256  ;;  %p805_p13 = scmp.lt.s32.totalorder %s220_s10, %s803_s7 }
  0x42   : > { %p800_p9 = pnand %p798_p7, %p786_p0  ;;  %p806_p5 = scmp.lt.s32.totalorder %s804_s9, %s797_s6 }
  0x44   : > { %p801_p3 = pneg %p800_p9  ;;  %p807_p4 = por %p806_p5, %p805_p13 }
  0x46   : > { %p808_p8 = pnand %p807_p4, %p801_p3 }
  0x48   : > { %811 = shalt.err (!%p808_p8)
}
  0x49   : > { %671 = dma.hbm_to_vmem [thread:$0]  (!%p1017_p11), %s1015_s8, 128, %s220_s10, %s209_s12  }
  0x4a   : > { %p1124_p10 = scmp.ne.s32.totalorder %s1119_s26, 0 }
  0x4b   : > { %s1038_s13 = sand.u32 (!%p1124_p10), 1, %s872_s19   ;;  %p1125_p4 = scmp.ne.s32.totalorder (!%p1124_p10), %s1117_s24, 0 }
  0x4c   : > { %228 = sbr.rel (%p1124_p10) target bundleno = 511 (0x1ff), region = 40  ;;  %s580_s14 = sshll.u32 (!%p1124_p10), %s1038_s13, 3 }
  0x4d   : > { %s231_s16 = scalar_lea.sflag (!%p1124_p10), [#allocation3], %s1038_s13  ;;  %s234_s17 = scalar_lea.vmem (!%p1124_p10), [#allocation2], %s580_s14 }
  0x51   : > { %855 = dma.done.wait (%p1125_p4), %s231_s16, 128  }
  0x52   : > { %857 = vsyncadd (%p1125_p4), %s231_s16, 4294967168  ;;  %p1126_p8 = scmp.eq.s32.totalorder %s941_s22, 0 }
  0x54   : > { %859 = dma.done.wait (%p1126_p8), [#allocation6], 1536   ;;  %p1127_p3 = pmov %p1126_p8 }
  0x55   : > { %v887_v0 = vmov 0.0   ;;  %vm888_vm0 = vmmov 0   ;;  %v720_v1 = vld [vmem:[#allocation5 + $0x18] sm:$0xff]   ;;  %v721_v2 = vld [vmem:[#allocation5 + $0x10] sm:$0xff]   ;;  %v722_v4 = vld [vmem:[#allocation5 + $0x8] sm:$0xff]   ;;  %vm311_vm1 = vcmask 523264  }
  0x56   : > { %861 = vsyncadd (%p1127_p3), [#allocation6], 4294965760  ;;  %617 = vmatprep.subr.bf16.mxu0 %v887_v0  ;;  %625 = vmatprep.mubr.msk.bf16.mxu0 %vm888_vm0, %v887_v0  ;;  %v724_v3 = vld [vmem:[#allocation7 + $0x38] sm:$0xff]   ;;  %v725_v5 = vld [vmem:[#allocation7 + $0x30] sm:$0xff]   ;;  %s600_s11 = sshll.u32 %s941_s22, 7  ;;  %s268_s12 = scalar_lea.vmem [#allocation8], %s580_s14 }
  0x57   : > { %629 = vmatprep.subr.bf16.mxu1 %v887_v0  ;;  %645 = vmatprep.mubr.msk.bf16.mxu1 %vm888_vm0, %v887_v0  ;;  %v723_v6 = vld [vmem:[#allocation5] sm:$0xff]   ;;  %v270_v7 = vld [vmem:[%s234_s17] sm:$0xff]  ;;  %v726_v8 = vld [vmem:[#allocation7 + $0x28] sm:$0xff]   ;;  %s483_s30 = sshll.u32 %s268_s12, 4  ;;  %s1064_s28 = scalar_lea.hbm %s1112_s5, %s600_s11  ;;  %s1066_s30 = int_to_ptr.vmem [resolvable:$true] %s483_s30 }
  0x58   : > { %618 = vmatpush3.bf16.msra.mxu0 %v720_v1  ;;  %630 = vmatpush3.bf16.msra.mxu1 %v724_v3  ;;  %v271_v9 = vpack.c.bf16 %v270_v7, %v270_v7  ;;  %v727_v10 = vld [vmem:[#allocation7 + $0x20] sm:$0xff]   ;;  %v728_v11 = vld [vmem:[#allocation7 + $0x18] sm:$0xff]   ;;  %v729_v12 = vld [vmem:[#allocation7 + $0x10] sm:$0xff]   ;;  %s470_s7 = scalar_lea.sflag [#allocation4], %s1038_s13  ;;  %s812_s22 = scalar_lea.vmem %s1066_s30, 128 }
  0x59   : > { %619 = vmatprep.subr.bf16.mxu0 %v887_v0  ;;  %631 = vmatprep.subr.bf16.mxu1 %v887_v0  ;;  %v730_v13 = vld [vmem:[#allocation7 + $0x8] sm:$0xff]   ;;  %v731_v14 = vld [vmem:[#allocation7] sm:$0xff]   ;;  %v584_v15 = vld [vmem:[%s1109_s2] ss:$0 sm:$0xff]  ;;  %p813_p11 = scmp.ne.s32.totalorder %s1066_s30, %s812_s22  ;;  %p1128_p0 = scmp.ne.s32.totalorder %s1122_s23, 0 }
  0x5a   : > { %v590_v23 = vld [vmem:[%s1111_s4] ss:$0 sm:$0xff]  ;;  %s889_s9 = smov [#allocation8]  }
  0x5b   : > { %p814_p1 = pnand %p813_p11, %p1128_p0  ;;  %s816_s14 = sshll.u32 %s889_s9, 4  ;;  %s817_s14 = int_to_ptr.vmem [resolvable:$false] %s816_s14 }
  0x5c   : > { %620 = vmatpush3.bf16.msra.mxu0 %v721_v2  ;;  %632 = vmatpush3.bf16.msra.mxu1 %v725_v5  ;;  %s818_s16 = scalar_lea.vmem %s817_s14, 256  ;;  %p819_p6 = scmp.lt.s32.totalorder %s1066_s30, %s817_s14 }
  0x5d   : > { %621 = vmatprep.subr.bf16.mxu0 %v887_v0  ;;  %633 = vmatprep.subr.bf16.mxu1 %v887_v0  ;;  %p815_p2 = pneg %p814_p1  ;;  %p820_p12 = scmp.lt.s32.totalorder %s818_s16, %s812_s22 }
  0x5f   : > { %p821_p7 = por %p820_p12, %p819_p6 }
  0x60   : > { %622 = vmatpush3.bf16.msra.mxu0 %v722_v4  ;;  %634 = vmatpush3.bf16.msra.mxu1 %v726_v8 }
  0x61   : > { %623 = vmatprep.subr.bf16.mxu0 %v887_v0  ;;  %635 = vmatprep.subr.bf16.mxu1 %v887_v0  ;;  %p822_p9 = pnand %p821_p7, %p815_p2 }
  0x64   : > { %624 = vmatpush3.bf16.msra.mxu0 %v723_v6  ;;  %636 = vmatpush3.bf16.msra.mxu1 %v727_v10 }
  0x65   : > { %637 = vmatprep.subr.bf16.mxu1 %v887_v0 }
  0x67   : > { %626 = vmatmul.mubr.msk.bf16.vlgmr.msra.gmra.mxu0 %vm311_vm1, %v271_v9 }
  0x68   : > { %638 = vmatpush3.bf16.msra.mxu1 %v728_v11 }
  0x69   : > { %639 = vmatprep.subr.bf16.mxu1 %v887_v0 }
  0x6c   : > { %640 = vmatpush3.bf16.msra.mxu1 %v729_v12 }
  0x6d   : > { %641 = vmatprep.subr.bf16.mxu1 %v887_v0 }
  0x70   : > { %642 = vmatpush3.bf16.msra.mxu1 %v730_v13 }
  0x71   : > { %643 = vmatprep.subr.bf16.mxu1 %v887_v0 }
  0x74   : > { %644 = vmatpush3.bf16.msra.mxu1 %v731_v14 }
 0x127   : > { %v349_v16 = vpop.f32.mrf.mxu0 }
 0x128   : > { %v350_v17 = vadd.f32 %v584_v15, %v349_v16 }
 0x129   : > { %v627_v18 = vpop.f32.mrf.mxu0 }
 0x12a   : > { %v355_v19 = vmax.f32 %v350_v17, 0.0 }
 0x12b   : > { %v352_v20 = vpop.f32.mrf.mxu0 }
 0x12c   : > { %v356_v21 = vpack.c.bf16 %v355_v19, %v355_v19 }
 0x12d   : > { %v628_v22 = vpop.f32.mrf.mxu0 }
 0x12e   : > { %646 = vmatmul.mubr.bf16.vlgmr.msra.gmra.mxu1 %v356_v21 }
 0x1ee   : > { %v462_v24 = vpop.f32.mrf.mxu1 }
 0x1ef   : > { %v463_v25 = vadd.f32 %v590_v23, %v462_v24 }
 0x1f0   : > { %v647_v26 = vpop.f32.mrf.mxu1 }
 0x1f1   : > { %468 = vst [vmem:[%s268_s12] sm:$0xff] %v463_v25 }
 0x1f2   : > { %v465_v27 = vpop.f32.mrf.mxu1 }
 0x1f3   : > { %825 = shalt.err (!%p822_p9)
}
 0x1f4   : > { %s826_s17 = scalar_lea.hbm %s1064_s28, 128  ;;  %s830_s26 = scalar_lea.hbm %s1112_s5, 256 }
 0x1f5   : > { %p827_p13 = scmp.ne.s32.totalorder %s1064_s28, %s826_s17  ;;  %p831_p4 = scmp.lt.s32.totalorder %s1064_s28, %s1112_s5 }
 0x1f6   : > { %p832_p8 = scmp.lt.s32.totalorder %s830_s26, %s826_s17 }
 0x1f7   : > { %p828_p5 = pnand %p827_p13, %p1128_p0 }
 0x1f8   : > { %p833_p3 = por %p832_p8, %p831_p4 }
 0x1f9   : > { %p829_p10 = pneg %p828_p5 }
 0x1fb   : > { %p834_p11 = pnand %p833_p3, %p829_p10 }
 0x1fd   : > { %837 = shalt.err (!%p834_p11)
}
 0x1fe   : > { %659 = dma.vmem_to_hbm [thread:$0]  (%p1128_p0), %s1066_s30, 128, %s1064_s28, %s470_s7   ;;  %v648_v28 = vpop.f32.mrf.mxu1 }
 0x1ff PF: > { %s495_s11 = sand.u32 1, %s868_s18   ;;  %p1129_p1 = scmp.ne.s32.totalorder %s1118_s25, 0 }
 0x200   : > { %p1130_p2 = scmp.ge.s32.totalorder %s880_s21, 2  ;;  %s496_s12 = scalar_lea.sflag [#allocation4], %s495_s11 }
 0x202   : > { %p673_p6 = pnand %p1130_p2, %p1129_p1 }
 0x204   : > { %p674_p12 = pneg %p673_p6 }
 0x206   : > { %863 = dma.done.wait (%p674_p12), %s496_s12, 128  }
 0x207   : > { %865 = vsyncadd (%p674_p12), %s496_s12, 4294967168  ;;  %p19_p7 = scmp.ge.s32.totalorder %s992_s15, 4   ;;  %s1131_s18 = smov %s872_s19 }
 0x208   : > { %s1132_s19 = smov %s876_s20  ;;  %s1133_s20 = smov %s1008_s27 }
 0x209   : > { %s1134_s21 = smov %s992_s15  ;;  %21 = sbr.rel (!%p19_p7) target bundleno = 6 (0x6), region = 93 }
 0x20e   :  { %501 = vsyncpa [#allocation3], 1 }
 0x20f   :  { %503 = vsyncpa [#allocation3 + $0x1], 1 }
 0x210   :  { %504 = vsyncpa [#allocation6], 1 }
 0x211   :  { %505 = vsyncpa [#allocation4], 1 }
 0x212   :  { %507 = vsyncpa [#allocation4 + $0x1], 1 }

</bundles_post_ra>
